<compile_context>
chip_gen: v7x
topology: tpu7x:2x2x1
jax: 0.10.0
libtpu: 0.0.40
codegen_flags: <defaults>
</compile_context>

<pallas_src>
import functools

import jax
import jax.numpy as jnp
from jax.experimental import pallas as pl
from jax.experimental.pallas import tpu as pltpu

LN_EPS = 1e-5  # PyTorch F.layer_norm default eps


def _round_up(a, b):
    return (a + b - 1) // b * b


def _vn_layernorm_kernel(x_ref, gamma_ref, beta_ref, o_ref, *, eps):
    x = x_ref[...]                                   # (V, D, TR)
    # L2 norm over the vector axis (original axis -2) -> (D, TR) plane.
    norms = jnp.sqrt(jnp.sum(x * x, axis=0))         # (D, TR)
    # LayerNorm over channels D (sublane axis), independently per row (lane).
    mean = jnp.mean(norms, axis=0, keepdims=True)    # (1, TR)
    centered = norms - mean
    var = jnp.mean(centered * centered, axis=0, keepdims=True)
    ln = centered * jax.lax.rsqrt(var + LN_EPS)      # (D, TR)
    ln = ln * gamma_ref[...] + beta_ref[...]         # (D, 1) broadcasts over lanes
    # Fused normalization + LN scaling: one reciprocal on the (D, TR) plane
    # instead of a full (V, D, TR) divide, then a single multiply per element.
    scale = ln * pl.reciprocal(jnp.maximum(norms, eps), approx=False)
    o_ref[...] = x * scale[None, :, :]


def _choose_row_tile(rows, bytes_per_row, target_tile_bytes=1 << 20):
    """Row tile: multiple of 128, ~target_tile_bytes of x payload per tile."""
    max_tr = max(128, (target_tile_bytes // bytes_per_row) // 128 * 128)
    padded = _round_up(rows, 128)
    if padded <= max_tr:
        # Small problem: split into two tiles when possible so both
        # TensorCores on a v7x megacore get work.
        if padded >= 256:
            return _round_up((padded + 1) // 2, 128)
        return padded
    return max_tr


def vn_layer_norm(x, gamma, beta, *, eps=1e-3):
    """x: (..., V, D) float32.  gamma, beta: (D,)."""
    *lead, V, D = x.shape
    rows = 1
    for s in lead:
        rows *= s

    # Re-layout so rows sit on the 128-lane axis: (rows, V, D) -> (V, D, rows).
    x2 = jnp.transpose(x.reshape(rows, V, D), (1, 2, 0))

    itemsize = jnp.dtype(x.dtype).itemsize
    tr = _choose_row_tile(rows, V * D * itemsize)
    padded_rows = _round_up(rows, tr)
    if padded_rows != rows:
        # Zero padding is numerically safe: zero norms are clamped to eps,
        # LN of an all-zero row stays finite, padded rows are sliced off.
        x2 = jnp.pad(x2, ((0, 0), (0, 0), (0, padded_rows - rows)))
    grid = (padded_rows // tr,)

    out = pl.pallas_call(
        functools.partial(_vn_layernorm_kernel, eps=eps),
        out_shape=jax.ShapeDtypeStruct((V, D, padded_rows), x.dtype),
        grid_spec=pltpu.PrefetchScalarGridSpec(
            num_scalar_prefetch=0,
            grid=grid,
            in_specs=[
                pl.BlockSpec((V, D, tr), lambda i: (0, 0, i)),
                # Constant block index -> Pallas fetches gamma/beta only once.
                pl.BlockSpec((D, 1), lambda i: (0, 0)),
                pl.BlockSpec((D, 1), lambda i: (0, 0)),
            ],
            out_specs=pl.BlockSpec((V, D, tr), lambda i: (0, 0, i)),
        ),
        compiler_params=pltpu.CompilerParams(
            dimension_semantics=("parallel",),
        ),
    )(x2, gamma.reshape(D, 1), beta.reshape(D, 1))

    out = out[:, :, :rows]
    return jnp.transpose(out, (2, 0, 1)).reshape(*lead, V, D)


def vn_layer_norm_ref(x, gamma, beta, *, eps=1e-3):
    """Pure-JAX reference mirroring the PyTorch module."""
    norms = jnp.linalg.norm(x, axis=-2)                      # (..., D)
    x_hat = x / jnp.maximum(norms, eps)[..., None, :]
    mean = jnp.mean(norms, axis=-1, keepdims=True)
    var = jnp.mean((norms - mean) ** 2, axis=-1, keepdims=True)
    ln = (norms - mean) / jnp.sqrt(var + LN_EPS) * gamma + beta
    return x_hat * ln[..., None, :]


if __name__ == "__main__":
    key = jax.random.PRNGKey(0)
    k1, k2, k3 = jax.random.split(key, 3)

    # Shapes consistent with Eq_Motion_Model_flatten: VNLayerNorm(dim=32) is
    # applied to vector features of shape (batch, 2, 32) in the output block.
    B, V, D = 16, 2, 32
    x = jax.random.normal(k1, (B, V, D), dtype=jnp.float32)
    # Module init: gamma = ones (perturbed here to exercise the affine path),
    # beta is a registered zero buffer.
    gamma = 1.0 + 0.1 * jax.random.normal(k2, (D,), dtype=jnp.float32)
    beta = jnp.zeros((D,), dtype=jnp.float32)

    out = jax.block_until_ready(vn_layer_norm(x, gamma, beta, eps=1e-3))
    ref = vn_layer_norm_ref(x, gamma, beta, eps=1e-3)
    assert out.shape == x.shape
    assert jnp.allclose(out, ref, atol=1e-4, rtol=1e-4), "mismatch vs reference"

    # Second case: exercises multi-tile grid + tail padding (rows = 1200).
    B2, S2 = 4, 300
    x_big = jax.random.normal(k3, (B2, S2, V, D), dtype=jnp.float32)
    out_big = jax.block_until_ready(vn_layer_norm(x_big, gamma, beta, eps=1e-3))
    ref_big = vn_layer_norm_ref(x_big, gamma, beta, eps=1e-3)
    assert out_big.shape == x_big.shape
    assert jnp.allclose(out_big, ref_big, atol=1e-4, rtol=1e-4), "mismatch (big)"

    print("KERNEL_OK")
</pallas_src>

<mosaic_0001>
module attributes {stable_mosaic.version = 11 : i64} {
  func.func @_vn_layernorm_kernel(%arg0: i32, %arg1: memref<2x32x128xf32, #tpu.memory_space<vmem>>, %arg2: memref<32x1xf32, #tpu.memory_space<vmem>>, %arg3: memref<32x1xf32, #tpu.memory_space<vmem>>, %arg4: memref<2x32x128xf32, #tpu.memory_space<vmem>>) attributes {dimension_semantics = [#tpu.dimension_semantics<parallel>], iteration_bounds = array<i64: 1>, scalar_prefetch = 0 : i64, scratch_operands = 0 : i64, tpu.core_type = #tpu.core_type<tc>, window_params = [{transform_indices = @transform_0, window_bounds = array<i64: 2, 32, 128>}, {pipeline_mode = #tpu.pipeline_mode<synchronous>, transform_indices = @transform_1, window_bounds = array<i64: 32, 1>}, {pipeline_mode = #tpu.pipeline_mode<synchronous>, transform_indices = @transform_2, window_bounds = array<i64: 32, 1>}, {transform_indices = @transform_3, window_bounds = array<i64: 2, 32, 128>}]} {
    %c0 = arith.constant 0 : index
    %c0_0 = arith.constant 0 : index
    %c0_1 = arith.constant 0 : index
    %0 = vector.load %arg1[%c0, %c0_0, %c0_1] : memref<2x32x128xf32, #tpu.memory_space<vmem>>, vector<2x32x128xf32>
    %1 = arith.mulf %0, %0 : vector<2x32x128xf32>
    %cst = arith.constant dense<0.000000e+00> : vector<32x128xf32>
    %2 = vector.multi_reduction <add>, %1, %cst [0] : vector<2x32x128xf32> to vector<32x128xf32>
    %3 = math.sqrt %2 : vector<32x128xf32>
    %cst_2 = arith.constant dense<0.000000e+00> : vector<128xf32>
    %4 = vector.multi_reduction <add>, %3, %cst_2 [0] : vector<32x128xf32> to vector<128xf32>
    %5 = vector.shape_cast %4 : vector<128xf32> to vector<1x128xf32>
    %cst_3 = arith.constant 3.200000e+01 : f32
    %6 = vector.broadcast %cst_3 : f32 to vector<1x128xf32>
    %7 = arith.divf %5, %6 : vector<1x128xf32>
    %8 = vector.broadcast %7 : vector<1x128xf32> to vector<32x128xf32>
    %9 = arith.subf %3, %8 : vector<32x128xf32>
    %10 = arith.mulf %9, %9 : vector<32x128xf32>
    %cst_4 = arith.constant dense<0.000000e+00> : vector<128xf32>
    %11 = vector.multi_reduction <add>, %10, %cst_4 [0] : vector<32x128xf32> to vector<128xf32>
    %12 = vector.shape_cast %11 : vector<128xf32> to vector<1x128xf32>
    %cst_5 = arith.constant 3.200000e+01 : f32
    %13 = vector.broadcast %cst_5 : f32 to vector<1x128xf32>
    %14 = arith.divf %12, %13 : vector<1x128xf32>
    %cst_6 = arith.constant 9.99999974E-6 : f32
    %15 = vector.broadcast %cst_6 : f32 to vector<1x128xf32>
    %16 = arith.addf %14, %15 : vector<1x128xf32>
    %17 = math.rsqrt %16 : vector<1x128xf32>
    %18 = vector.broadcast %17 : vector<1x128xf32> to vector<32x128xf32>
    %19 = arith.mulf %9, %18 : vector<32x128xf32>
    %c0_7 = arith.constant 0 : index
    %c0_8 = arith.constant 0 : index
    %20 = vector.load %arg2[%c0_7, %c0_8] : memref<32x1xf32, #tpu.memory_space<vmem>>, vector<32x1xf32>
    %21 = vector.broadcast %20 : vector<32x1xf32> to vector<32x128xf32>
    %22 = arith.mulf %19, %21 : vector<32x128xf32>
    %c0_9 = arith.constant 0 : index
    %c0_10 = arith.constant 0 : index
    %23 = vector.load %arg3[%c0_9, %c0_10] : memref<32x1xf32, #tpu.memory_space<vmem>>, vector<32x1xf32>
    %24 = vector.broadcast %23 : vector<32x1xf32> to vector<32x128xf32>
    %25 = arith.addf %22, %24 : vector<32x128xf32>
    %cst_11 = arith.constant 1.000000e-03 : f32
    %26 = vector.broadcast %cst_11 : f32 to vector<32x128xf32>
    %27 = arith.maximumf %3, %26 : vector<32x128xf32>
    %28 = tpu.reciprocal %27 : vector<32x128xf32> -> vector<32x128xf32>
    %29 = arith.mulf %25, %28 : vector<32x128xf32>
    %30 = vector.shape_cast %29 : vector<32x128xf32> to vector<1x32x128xf32>
    %31 = vector.broadcast %30 : vector<1x32x128xf32> to vector<2x32x128xf32>
    %32 = arith.mulf %0, %31 : vector<2x32x128xf32>
    %c0_12 = arith.constant 0 : index
    %c0_13 = arith.constant 0 : index
    %c0_14 = arith.constant 0 : index
    %33 = vector.load %arg4[%c0_12, %c0_13, %c0_14] : memref<2x32x128xf32, #tpu.memory_space<vmem>>, vector<2x32x128xf32>
    tpu.vector_store %arg4[%c0_12, %c0_13, %c0_14], %32 {strides = array<i32>} : memref<2x32x128xf32, #tpu.memory_space<vmem>>, vector<2x32x128xf32>,
    return
  }
  func.func @transform_0(%arg0: i32) -> (i32, i32, i32) {
    %c0_i32 = arith.constant 0 : i32
    %c0_i32_0 = arith.constant 0 : i32
    %c0_i32_1 = arith.constant 0 : i32
    return %c0_i32, %c0_i32_0, %arg0 : i32, i32, i32
  }
  func.func @transform_1(%arg0: i32) -> (i32, i32) {
    %c0_i32 = arith.constant 0 : i32
    %c0_i32_0 = arith.constant 0 : i32
    %c0_i32_1 = arith.constant 0 : i32
    return %c0_i32, %c0_i32_0 : i32, i32
  }
  func.func @transform_2(%arg0: i32) -> (i32, i32) {
    %c0_i32 = arith.constant 0 : i32
    %c0_i32_0 = arith.constant 0 : i32
    %c0_i32_1 = arith.constant 0 : i32
    return %c0_i32, %c0_i32_0 : i32, i32
  }
  func.func @transform_3(%arg0: i32) -> (i32, i32, i32) {
    %c0_i32 = arith.constant 0 : i32
    %c0_i32_0 = arith.constant 0 : i32
    %c0_i32_1 = arith.constant 0 : i32
    return %c0_i32, %c0_i32_0, %arg0 : i32, i32, i32
  }
}

</mosaic_0001>

<bundles_post_ra>
// kernel: tpu_custom_call.1
= control target key start
LH: loop header
LB: loop body
LE: loop exit
PB: predicated region body
PF: predicated region fallthrough
CT: control target
= control target key end

     0   :  { %v246_v2 = vmov 0   ;;  %s370_s0 = inlined_call_operand.vmem [shape: f32[2,32,128], index: 0, kind: input, shape index: {}]   ;;  %s371_s1 = inlined_call_operand.vmem [shape: f32[32,1], index: 1, kind: input, shape index: {}]   ;;  %s372_s2 = inlined_call_operand.vmem [shape: f32[32,1], index: 2, kind: input, shape index: {}]   ;;  %s373_s3 = inlined_call_operand.hbm [shape: f32[2,32,128], index: 3, kind: output, shape index: {}]  }
   0x1   :  { %v100_v0 = vld [vmem:[%s371_s1 + $0x10] sm:$0xff]  ;;  %v98_v1 = vld [vmem:[%s371_s1] sm:$0xff]  ;;  %203 = vset.pattern.permute.xlu1 %v246_v2  ;;  %202 = vset.pattern.permute.xlu0 %v246_v2  ;;  %v101_v3 = vld [vmem:[%s371_s1 + $0x18] sm:$0xff] }
   0x2   :  { %114 = vperm.xlu1 %203, %v100_v0   ;;  %104 = vperm.xlu0 %202, %v98_v1   ;;  %v99_v4 = vld [vmem:[%s371_s1 + $0x8] sm:$0xff]  ;;  %v285_v5 = vld [vmem:[%s370_s0] sm:$0xff]  ;;  %v295_v7 = vld [vmem:[%s370_s0 + $0x10] sm:$0xff] }
   0x3   :  { %v290_v6 = vld [vmem:[%s370_s0 + $0x8] sm:$0xff]  ;;  %v300_v8 = vld [vmem:[%s370_s0 + $0x18] sm:$0xff]  ;;  %v23_v9 = vmul.f32 %v285_v5, %v285_v5  ;;  %v307_v10 = vld [vmem:[%s370_s0 + $0x20] sm:$0xff]  ;;  %v25_v14 = vmul.f32 %v295_v7, %v295_v7 }
   0x4   :  { %v312_v11 = vld [vmem:[%s370_s0 + $0x28] sm:$0xff]  ;;  %v317_v12 = vld [vmem:[%s370_s0 + $0x30] sm:$0xff]  ;;  %v24_v13 = vmul.f32 %v290_v6, %v290_v6  ;;  %v26_v15 = vmul.f32 %v300_v8, %v300_v8  ;;  %v328_v16 = vld [vmem:[%s370_s0 + $0x38] sm:$0xff]  ;;  %v27_v17 = vmul.f32 %v307_v10, %v307_v10 }
   0x5   :  { %v28_v18 = vmul.f32 %v312_v11, %v312_v11  ;;  %v29_v19 = vmul.f32 %v317_v12, %v317_v12 }
   0x6   :  { %8 = vsyncpa [#allocation3], 0  ;;  %119 = vperm.xlu1 %203, %v101_v3   ;;  %109 = vperm.xlu0 %202, %v99_v4   ;;  %v30_v20 = vmul.f32 %v328_v16, %v328_v16  ;;  %v127_v21 = vld [vmem:[%s372_s2 + $0x8] sm:$0xff]  ;;  %v126_v22 = vld [vmem:[%s372_s2] sm:$0xff]  ;;  %v31_v23 = vadd.f32 %v27_v17, %v23_v9 }
   0x7   :  { %v32_v24 = vadd.f32 %v28_v18, %v24_v13  ;;  %v33_v25 = vadd.f32 %v29_v19, %v25_v14  ;;  %v129_v27 = vld [vmem:[%s372_s2 + $0x18] sm:$0xff]  ;;  %v128_v28 = vld [vmem:[%s372_s2 + $0x10] sm:$0xff]  ;;  %s247_s2 = smov [#allocation2]  }
   0x8   :  { %v34_v26 = vadd.f32 %v30_v20, %v26_v15  ;;  %204 = vrsqrt.f32 %v31_v23  ;;  %vm37_vm0 = vcmp.eq.f32.partialorder %v31_v23, inf  ;;  %v40_v32 = vand.u32 2147483648, %v31_v23  ;;  %s187_s15 = sshll.u32 %s247_s2, 4  ;;  %s188_s15 = int_to_ptr.vmem [resolvable:$true] %s187_s15 }
   0x9   :  { %206 = vrsqrt.f32 %v32_v24  ;;  %vm44_vm1 = vcmp.eq.f32.partialorder %v32_v24, inf  ;;  %v47_v33 = vand.u32 2147483648, %v32_v24  ;;  %vm39_vm2 = vcmp.eq.f32.partialorder %v31_v23, 0.0  ;;  %s222_s16 = scalar_lea.vmem %s188_s15, 1024  ;;  %p227_p1 = scmp.lt.s32.totalorder %s188_s15, %s188_s15 }
   0xa   :  { %137 = vperm.xlu1 %203, %v127_v21   ;;  %132 = vperm.xlu0 %202, %v126_v22   ;;  %208 = vrsqrt.f32 %v33_v25  ;;  %vm46_vm3 = vcmp.eq.f32.partialorder %v32_v24, 0.0  ;;  %vm51_vm4 = vcmp.eq.f32.partialorder %v33_v25, inf  ;;  %v54_v42 = vand.u32 2147483648, %v33_v25  ;;  %p223_p0 = scmp.ne.s32.totalorder %s188_s15, %s222_s16  ;;  %p228_p2 = scmp.lt.s32.totalorder %s222_s16, %s222_s16 }
   0xb   :  { %210 = vrsqrt.f32 %v34_v26  ;;  %vm53_vm5 = vcmp.eq.f32.partialorder %v33_v25, 0.0  ;;  %vm58_vm6 = vcmp.eq.f32.partialorder %v34_v26, inf  ;;  %v61_v47 = vand.u32 2147483648, %v34_v26 }
   0xc   :  { %vm60_vm7 = vcmp.eq.f32.partialorder %v34_v26, 0.0  ;;  %p229_p3 = por %p228_p2, %p227_p1 }
   0xe   :  { %147 = vperm.xlu1 %203, %v129_v27   ;;  %142 = vperm.xlu0 %202, %v128_v28   ;;  %p230_p4 = pnand %p229_p3, %p223_p0 }
  0x12   :  { %v205_v29 = vpop.eup %204 }
  0x13   :  { %v207_v30 = vpop.eup %206  ;;  %v36_v31 = vmul.f32 %v205_v29, %v31_v23 }
  0x14   :  { %v209_v34 = vpop.eup %208  ;;  %v43_v35 = vmul.f32 %v207_v30, %v32_v24 }
  0x15   :  { %v211_v36 = vpop.eup %210  ;;  %v38_v37 = vsel %vm37_vm0, %v31_v23, %v36_v31  ;;  %v50_v38 = vmul.f32 %v209_v34, %v33_v25 }
  0x16   :  { %v45_v39 = vsel %vm44_vm1, %v32_v24, %v43_v35  ;;  %v41_v40 = vsel %vm39_vm2, %v40_v32, %v38_v37  ;;  %v57_v44 = vmul.f32 %v211_v36, %v34_v26 }
  0x17   :  { %v48_v41 = vsel %vm46_vm3, %v47_v33, %v45_v39  ;;  %v52_v43 = vsel %vm51_vm4, %v33_v25, %v50_v38  ;;  %v154_v22 = vmax.f32 %v41_v40, 0.001 }
  0x18   :  { %v63_v45 = vadd.f32 %v48_v41, %v41_v40  ;;  %v55_v46 = vsel %vm53_vm5, %v54_v42, %v52_v43  ;;  %v59_v48 = vsel %vm58_vm6, %v34_v26, %v57_v44  ;;  %v155_v23 = vmax.f32 %v48_v41, 0.001 }
  0x19   :  { %v62_v50 = vsel %vm60_vm7, %v61_v47, %v59_v48  ;;  %v156_v24 = vmax.f32 %v55_v46, 0.001 }
  0x1a   :  { %v64_v49 = vadd.f32 %v63_v45, %v55_v46  ;;  %v157_v25 = vmax.f32 %v62_v50, 0.001 }
  0x1c   :  { %v65_v51 = vadd.f32 %v64_v49, %v62_v50 }
  0x1e   :  { %v66_v52 = vrot.slane %v65_v51, 4 }
  0x20   :  { %v67_v53 = vadd.f32 %v66_v52, %v65_v51 }
  0x22   :  { %v68_v54 = vrot.slane %v67_v53, 2 }
  0x24   :  { %v69_v55 = vadd.f32 %v68_v54, %v67_v53 }
  0x26   :  { %v70_v56 = vrot.slane %v69_v55, 1 }
  0x28   :  { %v71_v57 = vadd.f32 %v70_v56, %v69_v55 }
  0x2a   :  { %v73_v58 = vmul.f32 0.03125, %v71_v57 }
  0x2c   :  { %v74_v59 = vsub.f32 %v41_v40, %v73_v58  ;;  %v75_v60 = vsub.f32 %v48_v41, %v73_v58  ;;  %v76_v61 = vsub.f32 %v55_v46, %v73_v58  ;;  %v77_v0 = vsub.f32 %v62_v50, %v73_v58 }
  0x2e   :  { %v78_v62 = vmul.f32 %v74_v59, %v74_v59  ;;  %v79_v63 = vmul.f32 %v75_v60, %v75_v60  ;;  %v80_v1 = vmul.f32 %v76_v61, %v76_v61  ;;  %v81_v3 = vmul.f32 %v77_v0, %v77_v0 }
  0x30   :  { %v82_v2 = vadd.f32 %v79_v63, %v78_v62 }
  0x32   :  { %v83_v4 = vadd.f32 %v82_v2, %v80_v1 }
  0x34   :  { %v84_v9 = vadd.f32 %v83_v4, %v81_v3 }
  0x36   :  { %v85_v13 = vrot.slane %v84_v9, 4 }
  0x38   :  { %v86_v14 = vadd.f32 %v85_v13, %v84_v9 }
  0x3a   :  { %v87_v15 = vrot.slane %v86_v14, 2 }
  0x3c   :  { %v88_v17 = vadd.f32 %v87_v15, %v86_v14 }
  0x3e   :  { %v89_v18 = vrot.slane %v88_v17, 1 }
  0x40   :  { %v90_v19 = vadd.f32 %v89_v18, %v88_v17 }
  0x42   :  { %v91_v20 = vmul.f32 0.03125, %v90_v19 }
  0x44   :  { %v92_v21 = vadd.f32 1e-05, %v91_v20 }
  0x46   :  { %212 = vrsqrt.f32 %v92_v21 }
  0x47   :  { %214 = vrcp.f32 %v154_v22 }
  0x48   :  { %216 = vrcp.f32 %v155_v23 }
  0x49   :  { %218 = vrcp.f32 %v156_v24 }
  0x4a   :  { %220 = vrcp.f32 %v157_v25 }
  0x50   :  { %v213_v26 = vpop.eup %212 }
  0x51   :  { %v94_v29 = vmul.f32 %v213_v26, %v74_v59  ;;  %v95_v30 = vmul.f32 %v213_v26, %v75_v60  ;;  %v215_v33 = vpop.eup %214  ;;  %v96_v37 = vmul.f32 %v213_v26, %v76_v61  ;;  %v97_v38 = vmul.f32 %v213_v26, %v77_v0 }
  0x52   :  { %v217_v36 = vpop.eup %216 }
  0x53   :  { %v219_v45 = vpop.eup %218 }
  0x54   :  { %v221_v50 = vpop.eup %220 }
  0x81   :  { %v115_v27 = vpop.permute.xlu1 %114  ;;  %v105_v28 = vpop.permute.xlu0 %104 }
  0x82   :  { %v122_v34 = vmul.f32 %v105_v28, %v94_v29  ;;  %v124_v46 = vmul.f32 %v115_v27, %v96_v37 }
  0x85   :  { %v120_v31 = vpop.permute.xlu1 %119  ;;  %v110_v32 = vpop.permute.xlu0 %109 }
  0x86   :  { %v123_v35 = vmul.f32 %v110_v32, %v95_v30  ;;  %v125_v47 = vmul.f32 %v120_v31, %v97_v38 }
  0x89   :  { %v138_v39 = vpop.permute.xlu1 %137  ;;  %v133_v40 = vpop.permute.xlu0 %132 }
  0x8a   :  { %v151_v41 = vadd.f32 %v138_v39, %v123_v35  ;;  %v150_v42 = vadd.f32 %v133_v40, %v122_v34 }
  0x8c   :  { %v163_v43 = vmul.f32 %v217_v36, %v151_v41  ;;  %v162_v44 = vmul.f32 %v215_v33, %v150_v42 }
  0x8d   :  { %v148_v48 = vpop.permute.xlu1 %147  ;;  %v143_v49 = vpop.permute.xlu0 %142 }
  0x8e   :  { %v167_v51 = vmul.f32 %v163_v43, %v290_v6  ;;  %v171_v52 = vmul.f32 %v163_v43, %v312_v11  ;;  %v166_v53 = vmul.f32 %v162_v44, %v285_v5  ;;  %v170_v54 = vmul.f32 %v162_v44, %v307_v10 }
  0x8f   :  { %v153_v55 = vadd.f32 %v148_v48, %v125_v47  ;;  %v152_v56 = vadd.f32 %v143_v49, %v124_v46 }
  0x90   :  { %175 = vst [vmem:[#allocation2 + $0x8] sm:$0xff] %v167_v51  ;;  %179 = vst [vmem:[#allocation2 + $0x28] sm:$0xff] %v171_v52 }
  0x91   :  { %174 = vst [vmem:[#allocation2] sm:$0xff] %v166_v53  ;;  %178 = vst [vmem:[#allocation2 + $0x20] sm:$0xff] %v170_v54  ;;  %v165_v57 = vmul.f32 %v221_v50, %v153_v55  ;;  %v164_v58 = vmul.f32 %v219_v45, %v152_v56 }
  0x93   :  { %v169_v59 = vmul.f32 %v165_v57, %v300_v8  ;;  %v173_v6 = vmul.f32 %v165_v57, %v328_v16  ;;  %v168_v11 = vmul.f32 %v164_v58, %v295_v7  ;;  %v172_v5 = vmul.f32 %v164_v58, %v317_v12 }
  0x95   :  { %177 = vst [vmem:[#allocation2 + $0x18] sm:$0xff] %v169_v59  ;;  %181 = vst [vmem:[#allocation2 + $0x38] sm:$0xff] %v173_v6 }
  0x96   :  { %176 = vst [vmem:[#allocation2 + $0x10] sm:$0xff] %v168_v11  ;;  %180 = vst [vmem:[#allocation2 + $0x30] sm:$0xff] %v172_v5 }
  0x97   :  { %233 = shalt.err (!%p230_p4)
}
  0x98   :  { %s234_s19 = scalar_lea.hbm %s373_s3, 1024 }
  0x99   :  { %p235_p5 = scmp.ne.s32.totalorder %s373_s3, %s234_s19  ;;  %p238_p6 = scmp.lt.u32.totalorder %s234_s19, %s373_s3 }
  0x9b   :  { %p240_p7 = pnand %p238_p6, %p235_p5 }
  0x9d   :  { %243 = shalt.err (!%p240_p7)
}
  0x9e   :  { %s248_s24 = smov 128   ;;  %s249_s25 = smov 8  }
  0x9f   :  { %193 = dma.vmem_to_hbm [thread:$0]  %s188_s15, 1024, %s373_s3, [#allocation3], %s248_s24, %s248_s24, %s249_s25  }
  0xa0   :  { %244 = dma.done.wait [#allocation3], 1024  }
  0xa1   :  { %245 = vsyncadd [#allocation3], 4294966272 }
  0xa2   :  { %197 = vsyncpa [#allocation3], 1 }

</bundles_post_ra>
